<compile_context>
chip_gen: v5e
topology: v5e:2x2
jax: 0.10.0
libtpu: 0.0.40
codegen_flags: <defaults>
</compile_context>

<pallas_src>
import jax
import jax.numpy as jnp
import numpy as np
from jax.experimental import pallas as pl
from jax.experimental.pallas import tpu as pltpu

EPS = 1e-5
LANE = 128
VMEM_LIMIT_BYTES = 32 * 1024 * 1024  # fits v5e/v6e/v7x scoped VMEM; tiles below stay far under this


def _round_up(x, m):
    return (x + m - 1) // m * m


# ----------------------------------------------------------------------------
# Pallas kernels
# ----------------------------------------------------------------------------
def matmul_stats_kernel(p_ref, w_ref, y_ref, stats_ref):
    """y = patches @ W (bf16 operands, f32 accumulation) and per-tile BN partial
    statistics (sum, sum of squares) so full-batch stats can be finalized later."""
    y = jnp.dot(p_ref[...], w_ref[...], preferred_element_type=jnp.float32)
    y_ref[...] = y
    s = jnp.sum(y, axis=0, keepdims=True)        # (1, Cp)
    ss = jnp.sum(y * y, axis=0, keepdims=True)   # (1, Cp) — one-pass stats
    cp = y.shape[1]
    rows = jax.lax.broadcasted_iota(jnp.int32, (8, cp), 0)
    packed = jnp.where(rows == 0, jnp.broadcast_to(s, (8, cp)),
                       jnp.where(rows == 1, jnp.broadcast_to(ss, (8, cp)), 0.0))
    stats_ref[...] = packed[None]


def bn_relu_kernel(y_ref, scale_ref, shift_ref, o_ref):
    """out = relu(y * scale + shift); scale/shift fold mean/var/gamma/beta."""
    o_ref[...] = jnp.maximum(y_ref[...] * scale_ref[...] + shift_ref[...], 0.0)


def bn_add_relu_kernel(y_ref, scale_ref, shift_ref, skip_ref, o_ref):
    """out = relu(y * scale + shift + skip) — identity residual branch."""
    o_ref[...] = jnp.maximum(
        y_ref[...] * scale_ref[...] + shift_ref[...] + skip_ref[...], 0.0)


def bn_conv1x1_add_relu_kernel(y_ref, scale_ref, shift_ref,
                               xs_ref, w3_ref, b3_ref, o_ref):
    """out = relu(y * scale + shift + (xs @ W3 + b3)) — fused 1x1-conv residual."""
    skip = jnp.dot(xs_ref[...], w3_ref[...],
                   preferred_element_type=jnp.float32) + b3_ref[...]
    o_ref[...] = jnp.maximum(y_ref[...] * scale_ref[...] + shift_ref[...] + skip, 0.0)


# ----------------------------------------------------------------------------
# pallas_call wrappers: grid over M (rows = pixels), lane-dense channel dims
# ----------------------------------------------------------------------------
def _compiler_params():
    return pltpu.CompilerParams(dimension_semantics=("parallel",),
                                vmem_limit_bytes=VMEM_LIMIT_BYTES)


def conv_matmul_with_stats(patches, w, *, tm):
    m, kp = patches.shape
    cp = w.shape[1]
    nt = m // tm
    return pl.pallas_call(
        matmul_stats_kernel,
        out_shape=(jax.ShapeDtypeStruct((m, cp), jnp.float32),
                   jax.ShapeDtypeStruct((nt, 8, cp), jnp.float32)),
        grid_spec=pltpu.PrefetchScalarGridSpec(
            num_scalar_prefetch=0, grid=(nt,),
            in_specs=[pl.BlockSpec((tm, kp), lambda i: (i, 0)),
                      pl.BlockSpec((kp, cp), lambda i: (0, 0))],
            out_specs=(pl.BlockSpec((tm, cp), lambda i: (i, 0)),
                       pl.BlockSpec((1, 8, cp), lambda i: (i, 0, 0)))),
        compiler_params=_compiler_params(),
    )(patches, w)


def bn_relu(y, scale, shift, *, tm):
    m, cp = y.shape
    return pl.pallas_call(
        bn_relu_kernel,
        out_shape=jax.ShapeDtypeStruct((m, cp), jnp.float32),
        grid_spec=pltpu.PrefetchScalarGridSpec(
            num_scalar_prefetch=0, grid=(m // tm,),
            in_specs=[pl.BlockSpec((tm, cp), lambda i: (i, 0)),
                      pl.BlockSpec((1, cp), lambda i: (0, 0)),
                      pl.BlockSpec((1, cp), lambda i: (0, 0))],
            out_specs=pl.BlockSpec((tm, cp), lambda i: (i, 0))),
        compiler_params=_compiler_params(),
    )(y, scale, shift)


def bn_add_relu(y, scale, shift, skip, *, tm):
    m, cp = y.shape
    return pl.pallas_call(
        bn_add_relu_kernel,
        out_shape=jax.ShapeDtypeStruct((m, cp), jnp.float32),
        grid_spec=pltpu.PrefetchScalarGridSpec(
            num_scalar_prefetch=0, grid=(m // tm,),
            in_specs=[pl.BlockSpec((tm, cp), lambda i: (i, 0)),
                      pl.BlockSpec((1, cp), lambda i: (0, 0)),
                      pl.BlockSpec((1, cp), lambda i: (0, 0)),
                      pl.BlockSpec((tm, cp), lambda i: (i, 0))],
            out_specs=pl.BlockSpec((tm, cp), lambda i: (i, 0))),
        compiler_params=_compiler_params(),
    )(y, scale, shift, skip)


def bn_conv1x1_add_relu(y, scale, shift, xs, w3, b3, *, tm):
    m, cp = y.shape
    cinp = xs.shape[1]
    return pl.pallas_call(
        bn_conv1x1_add_relu_kernel,
        out_shape=jax.ShapeDtypeStruct((m, cp), jnp.float32),
        grid_spec=pltpu.PrefetchScalarGridSpec(
            num_scalar_prefetch=0, grid=(m // tm,),
            in_specs=[pl.BlockSpec((tm, cp), lambda i: (i, 0)),
                      pl.BlockSpec((1, cp), lambda i: (0, 0)),
                      pl.BlockSpec((1, cp), lambda i: (0, 0)),
                      pl.BlockSpec((tm, cinp), lambda i: (i, 0)),
                      pl.BlockSpec((cinp, cp), lambda i: (0, 0)),
                      pl.BlockSpec((1, cp), lambda i: (0, 0))],
            out_specs=pl.BlockSpec((tm, cp), lambda i: (i, 0))),
        compiler_params=_compiler_params(),
    )(y, scale, shift, xs, w3, b3)


# ----------------------------------------------------------------------------
# Plain-JAX glue: im2col, weight layout, padding, BN finalize
# ----------------------------------------------------------------------------
def im2col(x_nhwc, k, stride, pad):
    n, h, w, c = x_nhwc.shape
    xp = jnp.pad(x_nhwc, ((0, 0), (pad, pad), (pad, pad), (0, 0)))
    ho = (h + 2 * pad - k) // stride + 1
    wo = (w + 2 * pad - k) // stride + 1
    cols = []
    for i in range(k):
        for j in range(k):
            cols.append(xp[:, i:i + stride * ho:stride, j:j + stride * wo:stride, :])
    patches = jnp.concatenate(cols, axis=-1)          # (N, Ho, Wo, K*K*C)
    return patches.reshape(n * ho * wo, k * k * c), ho, wo


def conv_weight_to_matrix(w_oikk):
    """(Cout, Cin, K, K) torch layout -> (K*K*Cin, Cout) matching im2col ordering."""
    cout, cin, k, _ = w_oikk.shape
    return jnp.transpose(w_oikk, (2, 3, 1, 0)).reshape(k * k * cin, cout)


def _pad2(a, rows, cols):
    r, c = a.shape
    return jnp.pad(a, ((0, rows - r), (0, cols - c)))


def _pad1(a, n):
    return jnp.pad(a, (0, n - a.shape[0]))


def _bn_scale_shift(stats, m_true, gamma, beta, cp):
    """Finalize full-batch BN stats from per-tile partial sums (tiny, plain JAX)."""
    tot = jnp.sum(stats, axis=0)                       # (8, Cp): row0=sum, row1=sumsq
    mean = tot[0] / m_true
    var = jnp.maximum(tot[1] / m_true - mean * mean, 0.0)
    scale = _pad1(gamma, cp) * jax.lax.rsqrt(var + EPS)
    shift = _pad1(beta, cp) - mean * scale
    return scale.reshape(1, cp), shift.reshape(1, cp)


# ----------------------------------------------------------------------------
# Residual block forward (Pallas version)
# ----------------------------------------------------------------------------
def residual_forward(x_nchw, params, *, stride, use_1x1conv, block_rows=512):
    x = jnp.transpose(x_nchw, (0, 2, 3, 1)).astype(jnp.float32)   # NCHW -> NHWC
    n, h, w, cin = x.shape
    cout = params["w1"].shape[0]
    cp = _round_up(cout, LANE)

    # conv1 (3x3, stride) as matmul + batch stats, then BN1 + ReLU.
    # The conv bias before BatchNorm cancels exactly under mean subtraction,
    # so b1/b2 are dropped from the kernel path (mathematically identical).
    p1, ho, wo = im2col(x, 3, stride, 1)
    m = n * ho * wo
    tm = min(block_rows, _round_up(m, 8))
    m_pad = _round_up(m, tm)
    kp1 = _round_up(p1.shape[1], LANE)
    p1 = _pad2(p1, m_pad, kp1).astype(jnp.bfloat16)
    w1 = _pad2(conv_weight_to_matrix(params["w1"]), kp1, cp).astype(jnp.bfloat16)
    y1, st1 = conv_matmul_with_stats(p1, w1, tm=tm)
    sc1, sh1 = _bn_scale_shift(st1, m, params["g1"], params["be1"], cp)
    h1 = bn_relu(y1, sc1, sh1, tm=tm)

    # conv2 (3x3, stride 1) as matmul + batch stats.
    # TODO(synk): stream the 9 conv taps via a reduction grid axis instead of
    # materializing the im2col patch matrix in HBM (remaining ~9x traffic win).
    h1_sp = h1[:m, :cout].reshape(n, ho, wo, cout)
    p2, _, _ = im2col(h1_sp, 3, 1, 1)
    kp2 = _round_up(p2.shape[1], LANE)
    p2 = _pad2(p2, m_pad, kp2).astype(jnp.bfloat16)
    w2 = _pad2(conv_weight_to_matrix(params["w2"]), kp2, cp).astype(jnp.bfloat16)
    y2, st2 = conv_matmul_with_stats(p2, w2, tm=tm)
    sc2, sh2 = _bn_scale_shift(st2, m, params["g2"], params["be2"], cp)

    # Fused BN2 + residual add + ReLU epilogue (skip branch fused in).
    if use_1x1conv:
        cinp = _round_up(cin, LANE)
        xs = _pad2(x[:, ::stride, ::stride, :].reshape(m, cin), m_pad, cinp)
        xs = xs.astype(jnp.bfloat16)
        w3 = _pad2(params["w3"].reshape(cout, cin).T, cinp, cp).astype(jnp.bfloat16)
        b3 = _pad1(params["b3"], cp).reshape(1, cp)
        out = bn_conv1x1_add_relu(y2, sc2, sh2, xs, w3, b3, tm=tm)
    else:
        skip = _pad2(x.reshape(m, cin), m_pad, cp)   # identity: Cin==Cout, stride==1
        out = bn_add_relu(y2, sc2, sh2, skip, tm=tm)

    out = out[:m, :cout].reshape(n, ho, wo, cout)
    return jnp.transpose(out, (0, 3, 1, 2))          # back to NCHW


# ----------------------------------------------------------------------------
# Pure-JAX reference (lax.conv) for verification
# ----------------------------------------------------------------------------
def _conv_ref(x_nhwc, w_oikk, b, stride, pad, conv_dtype):
    out = jax.lax.conv_general_dilated(
        x_nhwc.astype(conv_dtype),
        jnp.transpose(w_oikk, (2, 3, 1, 0)).astype(conv_dtype),
        window_strides=(stride, stride), padding=((pad, pad), (pad, pad)),
        dimension_numbers=("NHWC", "HWIO", "NHWC"),
        preferred_element_type=jnp.float32)
    return out + b.reshape(1, 1, 1, -1)


def _bn_ref(y, gamma, beta):
    mean = jnp.mean(y, axis=(0, 1, 2), keepdims=True)
    var = jnp.mean((y - mean) ** 2, axis=(0, 1, 2), keepdims=True)
    return (y - mean) * jax.lax.rsqrt(var + EPS) * gamma.reshape(1, 1, 1, -1) \
        + beta.reshape(1, 1, 1, -1)


def residual_ref(x_nchw, params, *, stride, use_1x1conv, conv_dtype=jnp.float32):
    x = jnp.transpose(x_nchw, (0, 2, 3, 1)).astype(jnp.float32)
    y = _conv_ref(x, params["w1"], params["b1"], stride, 1, conv_dtype)
    y = jnp.maximum(_bn_ref(y, params["g1"], params["be1"]), 0.0)
    y = _conv_ref(y, params["w2"], params["b2"], 1, 1, conv_dtype)
    y = _bn_ref(y, params["g2"], params["be2"])
    if use_1x1conv:
        skip = _conv_ref(x, params["w3"], params["b3"], stride, 0, conv_dtype)
    else:
        skip = x
    out = jnp.maximum(y + skip, 0.0)
    return jnp.transpose(out, (0, 3, 1, 2))


# ----------------------------------------------------------------------------
# Deterministic parameter construction
# ----------------------------------------------------------------------------
def make_params(key, in_channels, num_channels, use_1x1conv):
    ks = jax.random.split(key, 6)
    p = {
        "w1": 0.1 * jax.random.normal(ks[0], (num_channels, in_channels, 3, 3), jnp.float32),
        "b1": 0.1 * jax.random.normal(ks[1], (num_channels,), jnp.float32),
        "g1": jnp.ones((num_channels,), jnp.float32),
        "be1": jnp.zeros((num_channels,), jnp.float32),
        "w2": 0.1 * jax.random.normal(ks[2], (num_channels, num_channels, 3, 3), jnp.float32),
        "b2": 0.1 * jax.random.normal(ks[3], (num_channels,), jnp.float32),
        "g2": jnp.ones((num_channels,), jnp.float32),
        "be2": jnp.zeros((num_channels,), jnp.float32),
    }
    if use_1x1conv:
        p["w3"] = 0.1 * jax.random.normal(ks[4], (num_channels, in_channels, 1, 1), jnp.float32)
        p["b3"] = 0.1 * jax.random.normal(ks[5], (num_channels,), jnp.float32)
    return p


if __name__ == "__main__":
    key = jax.random.PRNGKey(0)
    kx, kpa, kpb = jax.random.split(key, 3)

    x = jax.random.normal(kx, (2, 4, 16, 16), jnp.float32)   # NCHW, like PyTorch

    # Config A: downsampling block (use_1x1conv=True, stride=2), Cin=4 -> Cout=8
    params_a = make_params(kpa, 4, 8, use_1x1conv=True)
    out_a = jax.block_until_ready(
        residual_forward(x, params_a, stride=2, use_1x1conv=True))
    assert out_a.shape == (2, 8, 8, 8)
    # matched-precision reference (bf16 conv operands, f32 accumulation): tight check
    ref_a_m = residual_ref(x, params_a, stride=2, use_1x1conv=True,
                           conv_dtype=jnp.bfloat16)
    np.testing.assert_allclose(np.asarray(out_a), np.asarray(ref_a_m),
                               rtol=5e-3, atol=5e-3)
    # full-f32 reference: loose check (documents bf16 operand quantization)
    ref_a_f = residual_ref(x, params_a, stride=2, use_1x1conv=True)
    np.testing.assert_allclose(np.asarray(out_a), np.asarray(ref_a_f),
                               rtol=5e-2, atol=5e-2)

    # Config B: identity-skip block (use_1x1conv=False, stride=1), Cin=Cout=4
    params_b = make_params(kpb, 4, 4, use_1x1conv=False)
    out_b = jax.block_until_ready(
        residual_forward(x, params_b, stride=1, use_1x1conv=False))
    assert out_b.shape == (2, 4, 16, 16)
    ref_b_m = residual_ref(x, params_b, stride=1, use_1x1conv=False,
                           conv_dtype=jnp.bfloat16)
    np.testing.assert_allclose(np.asarray(out_b), np.asarray(ref_b_m),
                               rtol=5e-3, atol=5e-3)
    ref_b_f = residual_ref(x, params_b, stride=1, use_1x1conv=False)
    np.testing.assert_allclose(np.asarray(out_b), np.asarray(ref_b_f),
                               rtol=5e-2, atol=5e-2)

    print("KERNEL_OK")
</pallas_src>

<mosaic_0001>
module attributes {stable_mosaic.version = 11 : i64} {
  func.func @matmul_stats_kernel(%arg0: i32, %arg1: memref<128x128xbf16, #tpu.memory_space<vmem>>, %arg2: memref<128x128xbf16, #tpu.memory_space<vmem>>, %arg3: memref<128x128xf32, #tpu.memory_space<vmem>>, %arg4: memref<1x8x128xf32, #tpu.memory_space<vmem>>) attributes {dimension_semantics = [#tpu.dimension_semantics<parallel>], iteration_bounds = array<i64: 1>, scalar_prefetch = 0 : i64, scratch_operands = 0 : i64, tpu.core_type = #tpu.core_type<tc>, window_params = [{transform_indices = @transform_0, window_bounds = array<i64: 128, 128>}, {pipeline_mode = #tpu.pipeline_mode<synchronous>, transform_indices = @transform_1, window_bounds = array<i64: 128, 128>}, {transform_indices = @transform_2, window_bounds = array<i64: 128, 128>}, {transform_indices = @transform_3, window_bounds = array<i64: 1, 8, 128>}]} {
    %c0 = arith.constant 0 : index
    %c0_0 = arith.constant 0 : index
    %0 = vector.load %arg1[%c0, %c0_0] : memref<128x128xbf16, #tpu.memory_space<vmem>>, vector<128x128xbf16>
    %c0_1 = arith.constant 0 : index
    %c0_2 = arith.constant 0 : index
    %1 = vector.load %arg2[%c0_1, %c0_2] : memref<128x128xbf16, #tpu.memory_space<vmem>>, vector<128x128xbf16>
    %cst = arith.constant dense<0.000000e+00> : vector<128x128xf32>
    %2 = tpu.matmul %0, %1, %cst {dimension_numbers = #tpu.dot_dimension_numbers<[1], [0], [0], [1], [0, 0, 1, 1], [], []>} : vector<128x128xbf16>, vector<128x128xbf16>, vector<128x128xf32> -> vector<128x128xf32>
    %c0_3 = arith.constant 0 : index
    %c0_4 = arith.constant 0 : index
    %3 = vector.load %arg3[%c0_3, %c0_4] : memref<128x128xf32, #tpu.memory_space<vmem>>, vector<128x128xf32>
    tpu.vector_store %arg3[%c0_3, %c0_4], %2 {strides = array<i32>} : memref<128x128xf32, #tpu.memory_space<vmem>>, vector<128x128xf32>,
    %cst_5 = arith.constant dense<0.000000e+00> : vector<128xf32>
    %4 = vector.multi_reduction <add>, %2, %cst_5 [0] : vector<128x128xf32> to vector<128xf32>
    %5 = vector.shape_cast %4 : vector<128xf32> to vector<1x128xf32>
    %6 = arith.mulf %2, %2 : vector<128x128xf32>
    %cst_6 = arith.constant dense<0.000000e+00> : vector<128xf32>
    %7 = vector.multi_reduction <add>, %6, %cst_6 [0] : vector<128x128xf32> to vector<128xf32>
    %8 = vector.shape_cast %7 : vector<128xf32> to vector<1x128xf32>
    %9 = tpu.iota {dimensions = array<i32: 0>} : vector<8x128xi32>
    %c0_i32 = arith.constant 0 : i32
    %10 = vector.broadcast %c0_i32 : i32 to vector<8x128xi32>
    %11 = arith.cmpi eq, %9, %10 : vector<8x128xi32>
    %12 = vector.shape_cast %5 : vector<1x128xf32> to vector<1x128xf32>
    %13 = vector.broadcast %12 : vector<1x128xf32> to vector<8x128xf32>
    %c1_i32 = arith.constant 1 : i32
    %14 = vector.broadcast %c1_i32 : i32 to vector<8x128xi32>
    %15 = arith.cmpi eq, %9, %14 : vector<8x128xi32>
    %16 = vector.shape_cast %8 : vector<1x128xf32> to vector<1x128xf32>
    %17 = vector.broadcast %16 : vector<1x128xf32> to vector<8x128xf32>
    %cst_7 = arith.constant 0.000000e+00 : f32
    %18 = vector.broadcast %cst_7 : f32 to vector<8x128xf32>
    %19 = arith.select %15, %17, %18 : vector<8x128xi1>, vector<8x128xf32>
    %20 = arith.select %11, %13, %19 : vector<8x128xi1>, vector<8x128xf32>
    %21 = vector.shape_cast %20 : vector<8x128xf32> to vector<1x8x128xf32>
    %c0_8 = arith.constant 0 : index
    %c0_9 = arith.constant 0 : index
    %c0_10 = arith.constant 0 : index
    %22 = vector.load %arg4[%c0_8, %c0_9, %c0_10] : memref<1x8x128xf32, #tpu.memory_space<vmem>>, vector<1x8x128xf32>
    tpu.vector_store %arg4[%c0_8, %c0_9, %c0_10], %21 {strides = array<i32>} : memref<1x8x128xf32, #tpu.memory_space<vmem>>, vector<1x8x128xf32>,
    return
  }
  func.func @transform_0(%arg0: i32) -> (i32, i32) {
    %c0_i32 = arith.constant 0 : i32
    %c0_i32_0 = arith.constant 0 : i32
    return %arg0, %c0_i32 : i32, i32
  }
  func.func @transform_1(%arg0: i32) -> (i32, i32) {
    %c0_i32 = arith.constant 0 : i32
    %c0_i32_0 = arith.constant 0 : i32
    %c0_i32_1 = arith.constant 0 : i32
    return %c0_i32, %c0_i32_0 : i32, i32
  }
  func.func @transform_2(%arg0: i32) -> (i32, i32) {
    %c0_i32 = arith.constant 0 : i32
    %c0_i32_0 = arith.constant 0 : i32
    return %arg0, %c0_i32 : i32, i32
  }
  func.func @transform_3(%arg0: i32) -> (i32, i32, i32) {
    %c0_i32 = arith.constant 0 : i32
    %c0_i32_0 = arith.constant 0 : i32
    %c0_i32_1 = arith.constant 0 : i32
    return %arg0, %c0_i32, %c0_i32_0 : i32, i32, i32
  }
}

</mosaic_0001>

<bundles_post_ra>
// kernel: tpu_custom_call.1
= control target key start
LH: loop header
LB: loop body
LE: loop exit
PB: predicated region body
PF: predicated region fallthrough
CT: control target
= control target key end

     0   :  { %9 = vsyncpa [#allocation3], 0  ;;  %s609_s0 = inlined_call_operand.hbm [shape: bf16[128,128], index: 0, kind: input, shape index: {}]   ;;  %s610_s1 = inlined_call_operand.hbm [shape: bf16[128,128], index: 1, kind: input, shape index: {}]   ;;  %s611_s2 = inlined_call_operand.hbm [shape: f32[128,128], index: 2, kind: output, shape index: {0}]   ;;  %s612_s3 = inlined_call_operand.hbm [shape: f32[1,8,128], index: 3, kind: output, shape index: {1}]  }
   0x1   :  { %10 = vsyncpa [#allocation6], 0 }
   0x2   :  { %11 = vsyncpa [#allocation4], 0 }
   0x3   :  { %12 = vsyncpa [#allocation9], 0  ;;  %s17_s14 = sshll.u32 %s609_s0, 4  ;;  %s557_s15 = smov [#allocation2]   ;;  %s18_s14 = int_to_ptr.hbm [resolvable:$true] %s17_s14 }
   0x4   :  { %s19_s16 = sshll.u32 %s557_s15, 4  ;;  %s30_s19 = sshll.u32 %s610_s1, 4  ;;  %s20_s16 = int_to_ptr.vmem [resolvable:$true] %s19_s16  ;;  %s31_s19 = int_to_ptr.hbm [resolvable:$true] %s30_s19 }
   0x5   :  { %s558_s20 = smov 64   ;;  %s559_s21 = smov 4  }
   0x6   :  { %25 = dma.hbm_to_vmem [thread:$0]  %s18_s14, 1024, %s20_s16, [#allocation3], %s558_s20, %s558_s20, %s559_s21  }
   0x7   :  { %s560_s22 = smov [#allocation5]  }
   0x8   :  { %s32_s23 = sshll.u32 %s560_s22, 4  ;;  %s33_s23 = int_to_ptr.vmem [resolvable:$true] %s32_s23 }
   0x9   :  { %38 = dma.hbm_to_vmem [thread:$0]  %s31_s19, 1024, %s33_s23, [#allocation6], %s558_s20, %s558_s20, %s559_s21  }
   0xa   :  { %549 = dma.done.wait [#allocation3], 1024  }
   0xb   :  { %550 = vsyncadd [#allocation3], 4294966272 }
   0xc   :  { %551 = dma.done.wait [#allocation6], 1024  }
   0xd   :  { %552 = vsyncadd [#allocation6], 4294966272  ;;  %v420_v0 = vld [vmem:[#allocation5 + $0x38] sm:$0xff]  ;;  %v419_v1 = vld [vmem:[#allocation5 + $0x30] sm:$0xff]  ;;  %s561_s0 = smov [#allocation7]   ;;  %s311_s26 = sshll.u32 %s611_s2, 4  ;;  %s312_s26 = int_to_ptr.hbm [resolvable:$true] %s311_s26 }
   0xe   :  { %175 = vmatpush.bf16.msra.mxu0 %v420_v0  ;;  %421 = vmatpush.bf16.msra.mxu1 %v420_v0  ;;  %v418_v2 = vld [vmem:[#allocation5 + $0x28] sm:$0xff]  ;;  %v417_v3 = vld [vmem:[#allocation5 + $0x20] sm:$0xff]  ;;  %v416_v4 = vld [vmem:[#allocation5 + $0x18] sm:$0xff]  ;;  %s309_s1 = sshll.u32 %s561_s0, 4  ;;  %s562_s27 = smov 128   ;;  %s310_s1 = int_to_ptr.vmem [resolvable:$true] %s309_s1 }
   0xf   :  { %422 = vmatpush.bf16.msra.mxu2 %v420_v0  ;;  %423 = vmatpush.bf16.msra.mxu3 %v420_v0  ;;  %v415_v5 = vld [vmem:[#allocation5 + $0x10] sm:$0xff]  ;;  %v414_v6 = vld [vmem:[#allocation5 + $0x8] sm:$0xff]  ;;  %v413_v7 = vld [vmem:[#allocation5] sm:$0xff]  ;;  %s563_s28 = smov 8   ;;  %s564_s2 = smov [#allocation8]  }
  0x10   :  { %v405_v8 = vld [vmem:[#allocation2] sm:$0xff]  ;;  %v407_v9 = vld [vmem:[#allocation2 + $0x10] sm:$0xff]  ;;  %v406_v12 = vld [vmem:[#allocation2 + $0x8] sm:$0xff]  ;;  %s323_s29 = sshll.u32 %s564_s2, 4  ;;  %s325_s5 = sshll.u32 %s612_s3, 4  ;;  %s324_s29 = int_to_ptr.vmem [resolvable:$true] %s323_s29  ;;  %s326_s5 = int_to_ptr.hbm [resolvable:$true] %s325_s5 }
  0x11   :  { %v409_v10 = vld [vmem:[#allocation2 + $0x20] sm:$0xff]  ;;  %v411_v11 = vld [vmem:[#allocation2 + $0x30] sm:$0xff]  ;;  %v408_v13 = vld [vmem:[#allocation2 + $0x18] sm:$0xff] }
  0x12   :  { %176 = vmatpush.bf16.msra.mxu0 %v419_v1  ;;  %424 = vmatpush.bf16.msra.mxu1 %v419_v1  ;;  %v410_v14 = vld [vmem:[#allocation2 + $0x28] sm:$0xff]  ;;  %v412_v15 = vld [vmem:[#allocation2 + $0x38] sm:$0xff] }
  0x13   :  { %425 = vmatpush.bf16.msra.mxu2 %v419_v1  ;;  %426 = vmatpush.bf16.msra.mxu3 %v419_v1 }
  0x16   :  { %177 = vmatpush.bf16.msra.mxu0 %v418_v2  ;;  %427 = vmatpush.bf16.msra.mxu1 %v418_v2 }
  0x17   :  { %428 = vmatpush.bf16.msra.mxu2 %v418_v2  ;;  %429 = vmatpush.bf16.msra.mxu3 %v418_v2 }
  0x1a   :  { %178 = vmatpush.bf16.msra.mxu0 %v417_v3  ;;  %430 = vmatpush.bf16.msra.mxu1 %v417_v3 }
  0x1b   :  { %431 = vmatpush.bf16.msra.mxu2 %v417_v3  ;;  %432 = vmatpush.bf16.msra.mxu3 %v417_v3 }
  0x1e   :  { %179 = vmatpush.bf16.msra.mxu0 %v416_v4  ;;  %433 = vmatpush.bf16.msra.mxu1 %v416_v4 }
  0x1f   :  { %434 = vmatpush.bf16.msra.mxu2 %v416_v4  ;;  %435 = vmatpush.bf16.msra.mxu3 %v416_v4 }
  0x22   :  { %180 = vmatpush.bf16.msra.mxu0 %v415_v5  ;;  %436 = vmatpush.bf16.msra.mxu1 %v415_v5 }
  0x23   :  { %437 = vmatpush.bf16.msra.mxu2 %v415_v5  ;;  %438 = vmatpush.bf16.msra.mxu3 %v415_v5 }
  0x26   :  { %181 = vmatpush.bf16.msra.mxu0 %v414_v6  ;;  %439 = vmatpush.bf16.msra.mxu1 %v414_v6 }
  0x27   :  { %440 = vmatpush.bf16.msra.mxu2 %v414_v6  ;;  %441 = vmatpush.bf16.msra.mxu3 %v414_v6 }
  0x2a   :  { %182 = vmatpush.bf16.msra.mxu0 %v413_v7  ;;  %442 = vmatpush.bf16.msra.mxu1 %v413_v7 }
  0x2b   :  { %443 = vmatpush.bf16.msra.mxu2 %v413_v7  ;;  %444 = vmatpush.bf16.msra.mxu3 %v413_v7 }
  0x2d   :  { %183 = vmatmul.bf16.vlgmr.msra.gmra.mxu0 %v405_v8  ;;  %193 = vmatmul.bf16.vlgmr.msra.gmra.mxu1 %v407_v9 }
  0x2e   :  { %203 = vmatmul.bf16.vlgmr.msra.gmra.mxu2 %v409_v10  ;;  %213 = vmatmul.bf16.vlgmr.msra.gmra.mxu3 %v411_v11 }
  0x3d   :  { %188 = vmatmul.bf16.gmra.mxu0 %v406_v12  ;;  %198 = vmatmul.bf16.gmra.mxu1 %v408_v13 }
  0x3e   :  { %208 = vmatmul.bf16.gmra.mxu2 %v410_v14  ;;  %218 = vmatmul.bf16.gmra.mxu3 %v412_v15 }
  0xaa   :  { %v184_v16 = vpop.f32.mrf.mxu0  ;;  %v194_v17 = vpop.f32.mrf.mxu1 }
  0xab   :  { %224 = vst [vmem:[#allocation7] sm:$0xff] %v184_v16  ;;  %v261_v27 = vmul.f32 %v184_v16, %v184_v16  ;;  %v265_v39 = vmul.f32 %v194_v17, %v194_v17 }
  0xac   :  { %228 = vst [vmem:[#allocation7 + $0x20] sm:$0xff] %v194_v17 }
  0xb1   :  { %v204_v18 = vpop.f32.mrf.mxu2  ;;  %v591_v19 = vpop.f32.mrf.mxu3 }
  0xb2   :  { %v186_v20 = vpop.f32.mrf.mxu0  ;;  %v196_v21 = vpop.f32.mrf.mxu1  ;;  %232 = vst [vmem:[#allocation7 + $0x40] sm:$0xff] %v204_v18  ;;  %v269_v53 = vmul.f32 %v204_v18, %v204_v18  ;;  %v273_v1 = vmul.f32 %v591_v19, %v591_v19 }
  0xb3   :  { %225 = vst [vmem:[#allocation7 + $0x8] sm:$0xff] %v186_v20  ;;  %v262_v26 = vmul.f32 %v186_v20, %v186_v20  ;;  %v240_v28 = vadd.f32 %v186_v20, %v184_v16  ;;  %v266_v42 = vmul.f32 %v196_v21, %v196_v21 }
  0xb4   :  { %229 = vst [vmem:[#allocation7 + $0x28] sm:$0xff] %v196_v21 }
  0xb5   :  { %236 = vst [vmem:[#allocation7 + $0x60] sm:$0xff] %v591_v19  ;;  %v277_v30 = vadd.f32 %v262_v26, %v261_v27 }
  0xb9   :  { %v206_v22 = vpop.f32.mrf.mxu2  ;;  %v594_v23 = vpop.f32.mrf.mxu3 }
  0xba   :  { %v189_v24 = vpop.f32.mrf.mxu0  ;;  %v199_v25 = vpop.f32.mrf.mxu1  ;;  %233 = vst [vmem:[#allocation7 + $0x48] sm:$0xff] %v206_v22  ;;  %v270_v56 = vmul.f32 %v206_v22, %v206_v22  ;;  %v274_v4 = vmul.f32 %v594_v23, %v594_v23 }
  0xbb   :  { %226 = vst [vmem:[#allocation7 + $0x10] sm:$0xff] %v189_v24  ;;  %v263_v29 = vmul.f32 %v189_v24, %v189_v24  ;;  %v241_v31 = vadd.f32 %v240_v28, %v189_v24  ;;  %v267_v45 = vmul.f32 %v199_v25, %v199_v25 }
  0xbc   :  { %230 = vst [vmem:[#allocation7 + $0x30] sm:$0xff] %v199_v25 }
  0xbd   :  { %237 = vst [vmem:[#allocation7 + $0x68] sm:$0xff] %v594_v23  ;;  %v278_v36 = vadd.f32 %v277_v30, %v263_v29 }
  0xc1   :  { %v209_v32 = vpop.f32.mrf.mxu2  ;;  %v219_v33 = vpop.f32.mrf.mxu3 }
  0xc2   :  { %v191_v34 = vpop.f32.mrf.mxu0  ;;  %v201_v35 = vpop.f32.mrf.mxu1  ;;  %234 = vst [vmem:[#allocation7 + $0x50] sm:$0xff] %v209_v32  ;;  %v271_v60 = vmul.f32 %v209_v32, %v209_v32  ;;  %v275_v8 = vmul.f32 %v219_v33, %v219_v33 }
  0xc3   :  { %227 = vst [vmem:[#allocation7 + $0x18] sm:$0xff] %v191_v34  ;;  %v242_v37 = vadd.f32 %v241_v31, %v191_v34  ;;  %v264_v38 = vmul.f32 %v191_v34, %v191_v34  ;;  %v268_v51 = vmul.f32 %v201_v35, %v201_v35 }
  0xc4   :  { %231 = vst [vmem:[#allocation7 + $0x38] sm:$0xff] %v201_v35 }
  0xc5   :  { %v243_v40 = vadd.f32 %v242_v37, %v194_v17  ;;  %v279_v41 = vadd.f32 %v278_v36, %v264_v38  ;;  %238 = vst [vmem:[#allocation7 + $0x70] sm:$0xff] %v219_v33  ;;  %v298_v17 = vlaneseq }
  0xc7   :  { %v280_v43 = vadd.f32 %v279_v41, %v265_v39  ;;  %v244_v44 = vadd.f32 %v243_v40, %v196_v21 }
  0xc9   :  { %v245_v46 = vadd.f32 %v244_v44, %v199_v25  ;;  %v281_v47 = vadd.f32 %v280_v43, %v266_v42  ;;  %v211_v48 = vpop.f32.mrf.mxu2  ;;  %v221_v49 = vpop.f32.mrf.mxu3 }
  0xca   :  { %235 = vst [vmem:[#allocation7 + $0x58] sm:$0xff] %v211_v48  ;;  %v272_v0 = vmul.f32 %v211_v48, %v211_v48  ;;  %v276_v12 = vmul.f32 %v221_v49, %v221_v49 }
  0xcb   :  { %v246_v50 = vadd.f32 %v245_v46, %v201_v35  ;;  %v282_v52 = vadd.f32 %v281_v47, %v267_v45  ;;  %239 = vst [vmem:[#allocation7 + $0x78] sm:$0xff] %v221_v49 }
  0xcc   :  { %317 = dma.vmem_to_hbm [thread:$0]  %s310_s1, 2048, %s312_s26, [#allocation4], %s562_s27, %s562_s27, %s563_s28  }
  0xcd   :  { %v247_v54 = vadd.f32 %v246_v50, %v204_v18  ;;  %v283_v55 = vadd.f32 %v282_v52, %v268_v51 }
  0xcf   :  { %v284_v57 = vadd.f32 %v283_v55, %v269_v53  ;;  %v248_v58 = vadd.f32 %v247_v54, %v206_v22  ;;  %v299_v22 = vshrl.u32 %v298_v17, 7 }
  0xd1   :  { %v249_v59 = vadd.f32 %v248_v58, %v209_v32  ;;  %v285_v61 = vadd.f32 %v284_v57, %v270_v56  ;;  %vm301_vm0 = vcmp.eq.s32.totalorder %v299_v22, 1  ;;  %vm300_vm1 = vcmp.eq.s32.totalorder %v299_v22, 0 }
  0xd3   :  { %v286_v62 = vadd.f32 %v285_v61, %v271_v60  ;;  %v250_v63 = vadd.f32 %v249_v59, %v211_v48 }
  0xd5   :  { %v251_v2 = vadd.f32 %v250_v63, %v591_v19  ;;  %v287_v3 = vadd.f32 %v286_v62, %v272_v0 }
  0xd7   :  { %v288_v5 = vadd.f32 %v287_v3, %v273_v1  ;;  %v252_v6 = vadd.f32 %v251_v2, %v594_v23 }
  0xd9   :  { %v253_v7 = vadd.f32 %v252_v6, %v219_v33  ;;  %v289_v9 = vadd.f32 %v288_v5, %v274_v4 }
  0xdb   :  { %v290_v10 = vadd.f32 %v289_v9, %v275_v8  ;;  %v254_v11 = vadd.f32 %v253_v7, %v221_v49 }
  0xdd   :  { %v255_v13 = vrot.slane %v254_v11, 4  ;;  %v291_v14 = vadd.f32 %v290_v10, %v276_v12 }
  0xdf   :  { %v256_v15 = vadd.f32 %v255_v13, %v254_v11  ;;  %v292_v16 = vrot.slane %v291_v14, 4 }
  0xe1   :  { %v257_v18 = vrot.slane %v256_v15, 2  ;;  %v293_v19 = vadd.f32 %v292_v16, %v291_v14 }
  0xe3   :  { %v258_v20 = vadd.f32 %v257_v18, %v256_v15  ;;  %v294_v21 = vrot.slane %v293_v19, 2 }
  0xe5   :  { %v295_v24 = vadd.f32 %v294_v21, %v293_v19  ;;  %v259_v25 = vrot.slane %v258_v20, 1 }
  0xe7   :  { %v296_v26 = vrot.slane %v295_v24, 1  ;;  %v260_v27 = vadd.f32 %v259_v25, %v258_v20 }
  0xe9   :  { %v297_v23 = vadd.f32 %v296_v26, %v295_v24 }
  0xeb   :  { %v302_v28 = vsel %vm301_vm0, %v297_v23, 0.0 }
  0xec   :  { %v303_v29 = vsel %vm300_vm1, %v260_v27, %v302_v28 }
  0xed   :  { %304 = vst [vmem:[#allocation8] sm:$0xff] %v303_v29 }
  0xee   :  { %328 = dma.vmem_to_hbm [thread:$0]  %s324_s29, 128, %s326_s5, [#allocation9]  }
  0xef   :  { %553 = dma.done.wait [#allocation4], 2048  }
  0xf0   :  { %554 = vsyncadd [#allocation4], 4294965248 }
  0xf1   :  { %555 = dma.done.wait [#allocation9], 128  }
  0xf2   :  { %556 = vsyncadd [#allocation9], 4294967168 }
  0xf3   :  { %337 = vsyncpa [#allocation3], 1 }
  0xf4   :  { %338 = vsyncpa [#allocation6], 1 }
  0xf5   :  { %339 = vsyncpa [#allocation4], 1 }
  0xf6   :  { %340 = vsyncpa [#allocation9], 1 }

</bundles_post_ra>
